<compile_context>
chip_gen: v6e
topology: v6e:2x2x1
jax: 0.10.0
libtpu: 0.0.40
codegen_flags: <defaults>
</compile_context>

<pallas_src>
import functools
import numpy as np
import jax
import jax.numpy as jnp
from jax import lax
from jax.experimental import pallas as pl
from jax.experimental.pallas import tpu as pltpu


# ---------------------------------------------------------------------------
# Model hyper-parameters (small, consistent with the module's __init__)
# ---------------------------------------------------------------------------
HIDDEN_DIM = 32
NUM_HEADS = 4
R = 4                      # low-rank dim per head
B = 2                      # batch
S = 16                     # original sequence length


def _subsample_len(seq_len: int) -> int:
    # (seq_len + int(sqrt(seq_len)) - 1) // int(sqrt(seq_len))
    root = int(seq_len ** 0.5)
    return (seq_len + root - 1) // root


def _seq_idx(seq_len: int, new_len: int) -> np.ndarray:
    # torch.linspace(0, seq_len-1, new_len).long()  -> truncation toward zero
    return np.linspace(0.0, seq_len - 1, new_len).astype(np.int64).astype(np.int32)


# ---------------------------------------------------------------------------
# Pallas kernel: single invocation, whole (tiny) problem resident in VMEM
# ---------------------------------------------------------------------------
def _attention_predictor_kernel(xs_ref, w_ref, b_ref, o_ref, *,
                                batch, sub_len, num_heads, r):
    # xs_ref : (B*L, D)        subsampled activations, batch-flattened rows
    # w_ref  : (D, 2*R*H)      packed [Wq | Wk]   (column order = h-major, r-minor)
    # b_ref  : (1, 2*R*H)      packed [bq | bk]
    # o_ref  : (B, H, L, L)    sigmoid(q_h @ k_h^T)
    rh = num_heads * r

    # Fused Q|K projection: a single 2-D MXU dot + bias add.
    qk = jnp.dot(xs_ref[...], w_ref[...],
                 preferred_element_type=jnp.float32) + b_ref[...]   # (N, 2RH)
    q = qk[:, :rh]                                                   # (N, RH)
    k = qk[:, rh:]                                                   # (N, RH)

    # Low-rank scores, static unroll over (batch, head); all slices are static,
    # contraction is on R (no transposes anywhere).
    for bb in range(batch):
        q_b = q[bb * sub_len:(bb + 1) * sub_len, :]                  # (L, RH)
        k_b = k[bb * sub_len:(bb + 1) * sub_len, :]                  # (L, RH)
        for h in range(num_heads):
            qh = q_b[:, h * r:(h + 1) * r]                           # (L, R)
            kh = k_b[:, h * r:(h + 1) * r]                           # (L, R)
            s = lax.dot_general(
                qh, kh,
                dimension_numbers=(((1,), (1,)), ((), ())),          # contract R
                preferred_element_type=jnp.float32)                  # (L, L)
            o_ref[bb, h, :, :] = jax.nn.sigmoid(s)


def attention_predictor_pallas(x, wq, bq, wk, bk, num_heads=NUM_HEADS, r=R):
    """x: (B, S, D) float32.  Returns (B, num_heads, L, L) float32."""
    b, s, d = x.shape
    L = _subsample_len(s)
    idx = _seq_idx(s, L)
    rh = num_heads * r

    # Static strided subsample + batch flatten (index glue, plain JAX wrapper).
    xs = x[:, idx, :].reshape(b * L, d)                              # (B*L, D)

    # Pack fused weights / bias once in the wrapper (column order already
    # matches torch's q.view(B, L, H, R): h-major, r-minor).
    w_packed = jnp.concatenate([wq, wk], axis=1)                     # (D, 2RH)
    b_packed = jnp.concatenate([bq, bk], axis=0).reshape(1, 2 * rh)  # (1, 2RH)

    # Advisory cost estimate (projection + scores + sigmoid).
    flops = 2 * (b * L) * d * (2 * rh) + 2 * b * num_heads * L * L * r
    transcendentals = b * num_heads * L * L
    bytes_accessed = 4 * (xs.size + w_packed.size + b_packed.size
                          + b * num_heads * L * L)

    kernel = functools.partial(_attention_predictor_kernel,
                               batch=b, sub_len=L, num_heads=num_heads, r=r)

    out = pl.pallas_call(
        kernel,
        out_shape=jax.ShapeDtypeStruct((b, num_heads, L, L), jnp.float32),
        in_specs=[
            pl.BlockSpec(memory_space=pltpu.MemorySpace.VMEM),       # xs
            pl.BlockSpec(memory_space=pltpu.MemorySpace.VMEM),       # packed W
            pl.BlockSpec(memory_space=pltpu.MemorySpace.VMEM),       # packed bias
        ],
        out_specs=pl.BlockSpec(memory_space=pltpu.MemorySpace.VMEM),
        cost_estimate=pl.CostEstimate(flops=flops,
                                      transcendentals=transcendentals,
                                      bytes_accessed=bytes_accessed),
    )(xs, w_packed, b_packed)
    return out


# ---------------------------------------------------------------------------
# Pure-JAX reference (mirrors the PyTorch forward exactly)
# ---------------------------------------------------------------------------
def attention_predictor_ref(x, wq, bq, wk, bk, num_heads=NUM_HEADS, r=R):
    b, s, d = x.shape
    L = _subsample_len(s)
    idx = _seq_idx(s, L)
    xs = x[:, idx, :]
    q = xs @ wq + bq                                                 # (B, L, r*H)
    k = xs @ wk + bk
    q = q.reshape(b, L, num_heads, r)
    k = k.reshape(b, L, num_heads, r)
    score = jnp.einsum('bqhr,bkhr->bhqk', q, k)
    return jax.nn.sigmoid(score)


if __name__ == "__main__":
    key = jax.random.PRNGKey(0)
    kx, kwq, kbq, kwk, kbk = jax.random.split(key, 5)

    rh = R * NUM_HEADS
    # nn.Linear(hidden_dim, r*num_heads): weight used here as (in, out), bias (out,)
    bound = 1.0 / np.sqrt(HIDDEN_DIM)
    wq = jax.random.uniform(kwq, (HIDDEN_DIM, rh), jnp.float32, -bound, bound)
    bq = jax.random.uniform(kbq, (rh,), jnp.float32, -bound, bound)
    wk = jax.random.uniform(kwk, (HIDDEN_DIM, rh), jnp.float32, -bound, bound)
    bk = jax.random.uniform(kbk, (rh,), jnp.float32, -bound, bound)

    x = jax.random.normal(kx, (B, S, HIDDEN_DIM), jnp.float32)

    out = attention_predictor_pallas(x, wq, bq, wk, bk)
    out = jax.block_until_ready(out)

    ref = attention_predictor_ref(x, wq, bq, wk, bk)
    np.testing.assert_allclose(np.asarray(out), np.asarray(ref),
                               rtol=1e-5, atol=1e-5)
    print("KERNEL_OK")
</pallas_src>

<mosaic_0001>
module attributes {stable_mosaic.version = 11 : i64} {
  func.func @_attention_predictor_kernel(%arg0: memref<8x32xf32, #tpu.memory_space<vmem>>, %arg1: memref<32x32xf32, #tpu.memory_space<vmem>>, %arg2: memref<1x32xf32, #tpu.memory_space<vmem>>, %arg3: memref<2x4x4x4xf32, #tpu.memory_space<vmem>>) attributes {dimension_semantics = [], scalar_prefetch = 0 : i64, scratch_operands = 0 : i64, tpu.core_type = #tpu.core_type<tc>} {
    %c0 = arith.constant 0 : index
    %c0_0 = arith.constant 0 : index
    %0 = vector.load %arg0[%c0, %c0_0] : memref<8x32xf32, #tpu.memory_space<vmem>>, vector<8x32xf32>
    %c0_1 = arith.constant 0 : index
    %c0_2 = arith.constant 0 : index
    %1 = vector.load %arg1[%c0_1, %c0_2] : memref<32x32xf32, #tpu.memory_space<vmem>>, vector<32x32xf32>
    %cst = arith.constant dense<0.000000e+00> : vector<8x32xf32>
    %2 = tpu.matmul %0, %1, %cst {dimension_numbers = #tpu.dot_dimension_numbers<[1], [0], [0], [1], [0, 0, 1, 1], [], []>} : vector<8x32xf32>, vector<32x32xf32>, vector<8x32xf32> -> vector<8x32xf32>
    %c0_3 = arith.constant 0 : index
    %c0_4 = arith.constant 0 : index
    %3 = vector.load %arg2[%c0_3, %c0_4] : memref<1x32xf32, #tpu.memory_space<vmem>>, vector<1x32xf32>
    %4 = vector.broadcast %3 : vector<1x32xf32> to vector<8x32xf32>
    %5 = arith.addf %2, %4 : vector<8x32xf32>
    %6 = vector.extract_strided_slice %5 {offsets = [0, 0], sizes = [8, 16], strides = [1, 1]} : vector<8x32xf32> to vector<8x16xf32>
    %7 = vector.extract_strided_slice %5 {offsets = [0, 16], sizes = [8, 16], strides = [1, 1]} : vector<8x32xf32> to vector<8x16xf32>
    %8 = vector.extract_strided_slice %6 {offsets = [0, 0], sizes = [4, 16], strides = [1, 1]} : vector<8x16xf32> to vector<4x16xf32>
    %9 = vector.extract_strided_slice %7 {offsets = [0, 0], sizes = [4, 16], strides = [1, 1]} : vector<8x16xf32> to vector<4x16xf32>
    %10 = vector.extract_strided_slice %8 {offsets = [0, 0], sizes = [4, 4], strides = [1, 1]} : vector<4x16xf32> to vector<4x4xf32>
    %11 = vector.extract_strided_slice %9 {offsets = [0, 0], sizes = [4, 4], strides = [1, 1]} : vector<4x16xf32> to vector<4x4xf32>
    %cst_5 = arith.constant dense<0.000000e+00> : vector<4x4xf32>
    %12 = tpu.matmul %10, %11, %cst_5 {dimension_numbers = #tpu.dot_dimension_numbers<[1], [1], [0], [0], [0, 0, 1, 0], [], []>} : vector<4x4xf32>, vector<4x4xf32>, vector<4x4xf32> -> vector<4x4xf32>
    %13 = arith.negf %12 : vector<4x4xf32>
    %14 = math.exp %13 : vector<4x4xf32>
    %cst_6 = arith.constant 1.000000e+00 : f32
    %15 = vector.broadcast %cst_6 : f32 to vector<4x4xf32>
    %16 = arith.addf %15, %14 : vector<4x4xf32>
    %17 = arith.divf %15, %16 : vector<4x4xf32>
    %c0_7 = arith.constant 0 : index
    %c0_8 = arith.constant 0 : index
    %c0_9 = arith.constant 0 : index
    %c0_10 = arith.constant 0 : index
    %18 = vector.load %arg3[%c0_7, %c0_8, %c0_9, %c0_10] : memref<2x4x4x4xf32, #tpu.memory_space<vmem>>, vector<1x1x4x4xf32>
    %19 = vector.shape_cast %18 : vector<1x1x4x4xf32> to vector<4x4xf32>
    %20 = vector.shape_cast %17 : vector<4x4xf32> to vector<1x1x4x4xf32>
    tpu.vector_store %arg3[%c0_7, %c0_8, %c0_9, %c0_10], %20 {strides = array<i32>} : memref<2x4x4x4xf32, #tpu.memory_space<vmem>>, vector<1x1x4x4xf32>,
    %21 = vector.extract_strided_slice %8 {offsets = [0, 4], sizes = [4, 4], strides = [1, 1]} : vector<4x16xf32> to vector<4x4xf32>
    %22 = vector.extract_strided_slice %9 {offsets = [0, 4], sizes = [4, 4], strides = [1, 1]} : vector<4x16xf32> to vector<4x4xf32>
    %cst_11 = arith.constant dense<0.000000e+00> : vector<4x4xf32>
    %23 = tpu.matmul %21, %22, %cst_11 {dimension_numbers = #tpu.dot_dimension_numbers<[1], [1], [0], [0], [0, 0, 1, 0], [], []>} : vector<4x4xf32>, vector<4x4xf32>, vector<4x4xf32> -> vector<4x4xf32>
    %24 = arith.negf %23 : vector<4x4xf32>
    %25 = math.exp %24 : vector<4x4xf32>
    %cst_12 = arith.constant 1.000000e+00 : f32
    %26 = vector.broadcast %cst_12 : f32 to vector<4x4xf32>
    %27 = arith.addf %26, %25 : vector<4x4xf32>
    %28 = arith.divf %26, %27 : vector<4x4xf32>
    %c0_13 = arith.constant 0 : index
    %c1 = arith.constant 1 : index
    %c0_14 = arith.constant 0 : index
    %c0_15 = arith.constant 0 : index
    %29 = vector.load %arg3[%c0_13, %c1, %c0_14, %c0_15] : memref<2x4x4x4xf32, #tpu.memory_space<vmem>>, vector<1x1x4x4xf32>
    %30 = vector.shape_cast %29 : vector<1x1x4x4xf32> to vector<4x4xf32>
    %31 = vector.shape_cast %28 : vector<4x4xf32> to vector<1x1x4x4xf32>
    tpu.vector_store %arg3[%c0_13, %c1, %c0_14, %c0_15], %31 {strides = array<i32>} : memref<2x4x4x4xf32, #tpu.memory_space<vmem>>, vector<1x1x4x4xf32>,
    %32 = vector.extract_strided_slice %8 {offsets = [0, 8], sizes = [4, 4], strides = [1, 1]} : vector<4x16xf32> to vector<4x4xf32>
    %33 = vector.extract_strided_slice %9 {offsets = [0, 8], sizes = [4, 4], strides = [1, 1]} : vector<4x16xf32> to vector<4x4xf32>
    %cst_16 = arith.constant dense<0.000000e+00> : vector<4x4xf32>
    %34 = tpu.matmul %32, %33, %cst_16 {dimension_numbers = #tpu.dot_dimension_numbers<[1], [1], [0], [0], [0, 0, 1, 0], [], []>} : vector<4x4xf32>, vector<4x4xf32>, vector<4x4xf32> -> vector<4x4xf32>
    %35 = arith.negf %34 : vector<4x4xf32>
    %36 = math.exp %35 : vector<4x4xf32>
    %cst_17 = arith.constant 1.000000e+00 : f32
    %37 = vector.broadcast %cst_17 : f32 to vector<4x4xf32>
    %38 = arith.addf %37, %36 : vector<4x4xf32>
    %39 = arith.divf %37, %38 : vector<4x4xf32>
    %c0_18 = arith.constant 0 : index
    %c2 = arith.constant 2 : index
    %c0_19 = arith.constant 0 : index
    %c0_20 = arith.constant 0 : index
    %40 = vector.load %arg3[%c0_18, %c2, %c0_19, %c0_20] : memref<2x4x4x4xf32, #tpu.memory_space<vmem>>, vector<1x1x4x4xf32>
    %41 = vector.shape_cast %40 : vector<1x1x4x4xf32> to vector<4x4xf32>
    %42 = vector.shape_cast %39 : vector<4x4xf32> to vector<1x1x4x4xf32>
    tpu.vector_store %arg3[%c0_18, %c2, %c0_19, %c0_20], %42 {strides = array<i32>} : memref<2x4x4x4xf32, #tpu.memory_space<vmem>>, vector<1x1x4x4xf32>,
    %43 = vector.extract_strided_slice %8 {offsets = [0, 12], sizes = [4, 4], strides = [1, 1]} : vector<4x16xf32> to vector<4x4xf32>
    %44 = vector.extract_strided_slice %9 {offsets = [0, 12], sizes = [4, 4], strides = [1, 1]} : vector<4x16xf32> to vector<4x4xf32>
    %cst_21 = arith.constant dense<0.000000e+00> : vector<4x4xf32>
    %45 = tpu.matmul %43, %44, %cst_21 {dimension_numbers = #tpu.dot_dimension_numbers<[1], [1], [0], [0], [0, 0, 1, 0], [], []>} : vector<4x4xf32>, vector<4x4xf32>, vector<4x4xf32> -> vector<4x4xf32>
    %46 = arith.negf %45 : vector<4x4xf32>
    %47 = math.exp %46 : vector<4x4xf32>
    %cst_22 = arith.constant 1.000000e+00 : f32
    %48 = vector.broadcast %cst_22 : f32 to vector<4x4xf32>
    %49 = arith.addf %48, %47 : vector<4x4xf32>
    %50 = arith.divf %48, %49 : vector<4x4xf32>
    %c0_23 = arith.constant 0 : index
    %c3 = arith.constant 3 : index
    %c0_24 = arith.constant 0 : index
    %c0_25 = arith.constant 0 : index
    %51 = vector.load %arg3[%c0_23, %c3, %c0_24, %c0_25] : memref<2x4x4x4xf32, #tpu.memory_space<vmem>>, vector<1x1x4x4xf32>
    %52 = vector.shape_cast %51 : vector<1x1x4x4xf32> to vector<4x4xf32>
    %53 = vector.shape_cast %50 : vector<4x4xf32> to vector<1x1x4x4xf32>
    tpu.vector_store %arg3[%c0_23, %c3, %c0_24, %c0_25], %53 {strides = array<i32>} : memref<2x4x4x4xf32, #tpu.memory_space<vmem>>, vector<1x1x4x4xf32>,
    %54 = vector.extract_strided_slice %6 {offsets = [4, 0], sizes = [4, 16], strides = [1, 1]} : vector<8x16xf32> to vector<4x16xf32>
    %55 = vector.extract_strided_slice %7 {offsets = [4, 0], sizes = [4, 16], strides = [1, 1]} : vector<8x16xf32> to vector<4x16xf32>
    %56 = vector.extract_strided_slice %54 {offsets = [0, 0], sizes = [4, 4], strides = [1, 1]} : vector<4x16xf32> to vector<4x4xf32>
    %57 = vector.extract_strided_slice %55 {offsets = [0, 0], sizes = [4, 4], strides = [1, 1]} : vector<4x16xf32> to vector<4x4xf32>
    %cst_26 = arith.constant dense<0.000000e+00> : vector<4x4xf32>
    %58 = tpu.matmul %56, %57, %cst_26 {dimension_numbers = #tpu.dot_dimension_numbers<[1], [1], [0], [0], [0, 0, 1, 0], [], []>} : vector<4x4xf32>, vector<4x4xf32>, vector<4x4xf32> -> vector<4x4xf32>
    %59 = arith.negf %58 : vector<4x4xf32>
    %60 = math.exp %59 : vector<4x4xf32>
    %cst_27 = arith.constant 1.000000e+00 : f32
    %61 = vector.broadcast %cst_27 : f32 to vector<4x4xf32>
    %62 = arith.addf %61, %60 : vector<4x4xf32>
    %63 = arith.divf %61, %62 : vector<4x4xf32>
    %c1_28 = arith.constant 1 : index
    %c0_29 = arith.constant 0 : index
    %c0_30 = arith.constant 0 : index
    %c0_31 = arith.constant 0 : index
    %64 = vector.load %arg3[%c1_28, %c0_29, %c0_30, %c0_31] : memref<2x4x4x4xf32, #tpu.memory_space<vmem>>, vector<1x1x4x4xf32>
    %65 = vector.shape_cast %64 : vector<1x1x4x4xf32> to vector<4x4xf32>
    %66 = vector.shape_cast %63 : vector<4x4xf32> to vector<1x1x4x4xf32>
    tpu.vector_store %arg3[%c1_28, %c0_29, %c0_30, %c0_31], %66 {strides = array<i32>} : memref<2x4x4x4xf32, #tpu.memory_space<vmem>>, vector<1x1x4x4xf32>,
    %67 = vector.extract_strided_slice %54 {offsets = [0, 4], sizes = [4, 4], strides = [1, 1]} : vector<4x16xf32> to vector<4x4xf32>
    %68 = vector.extract_strided_slice %55 {offsets = [0, 4], sizes = [4, 4], strides = [1, 1]} : vector<4x16xf32> to vector<4x4xf32>
    %cst_32 = arith.constant dense<0.000000e+00> : vector<4x4xf32>
    %69 = tpu.matmul %67, %68, %cst_32 {dimension_numbers = #tpu.dot_dimension_numbers<[1], [1], [0], [0], [0, 0, 1, 0], [], []>} : vector<4x4xf32>, vector<4x4xf32>, vector<4x4xf32> -> vector<4x4xf32>
    %70 = arith.negf %69 : vector<4x4xf32>
    %71 = math.exp %70 : vector<4x4xf32>
    %cst_33 = arith.constant 1.000000e+00 : f32
    %72 = vector.broadcast %cst_33 : f32 to vector<4x4xf32>
    %73 = arith.addf %72, %71 : vector<4x4xf32>
    %74 = arith.divf %72, %73 : vector<4x4xf32>
    %c1_34 = arith.constant 1 : index
    %c1_35 = arith.constant 1 : index
    %c0_36 = arith.constant 0 : index
    %c0_37 = arith.constant 0 : index
    %75 = vector.load %arg3[%c1_34, %c1_35, %c0_36, %c0_37] : memref<2x4x4x4xf32, #tpu.memory_space<vmem>>, vector<1x1x4x4xf32>
    %76 = vector.shape_cast %75 : vector<1x1x4x4xf32> to vector<4x4xf32>
    %77 = vector.shape_cast %74 : vector<4x4xf32> to vector<1x1x4x4xf32>
    tpu.vector_store %arg3[%c1_34, %c1_35, %c0_36, %c0_37], %77 {strides = array<i32>} : memref<2x4x4x4xf32, #tpu.memory_space<vmem>>, vector<1x1x4x4xf32>,
    %78 = vector.extract_strided_slice %54 {offsets = [0, 8], sizes = [4, 4], strides = [1, 1]} : vector<4x16xf32> to vector<4x4xf32>
    %79 = vector.extract_strided_slice %55 {offsets = [0, 8], sizes = [4, 4], strides = [1, 1]} : vector<4x16xf32> to vector<4x4xf32>
    %cst_38 = arith.constant dense<0.000000e+00> : vector<4x4xf32>
    %80 = tpu.matmul %78, %79, %cst_38 {dimension_numbers = #tpu.dot_dimension_numbers<[1], [1], [0], [0], [0, 0, 1, 0], [], []>} : vector<4x4xf32>, vector<4x4xf32>, vector<4x4xf32> -> vector<4x4xf32>
    %81 = arith.negf %80 : vector<4x4xf32>
    %82 = math.exp %81 : vector<4x4xf32>
    %cst_39 = arith.constant 1.000000e+00 : f32
    %83 = vector.broadcast %cst_39 : f32 to vector<4x4xf32>
    %84 = arith.addf %83, %82 : vector<4x4xf32>
    %85 = arith.divf %83, %84 : vector<4x4xf32>
    %c1_40 = arith.constant 1 : index
    %c2_41 = arith.constant 2 : index
    %c0_42 = arith.constant 0 : index
    %c0_43 = arith.constant 0 : index
    %86 = vector.load %arg3[%c1_40, %c2_41, %c0_42, %c0_43] : memref<2x4x4x4xf32, #tpu.memory_space<vmem>>, vector<1x1x4x4xf32>
    %87 = vector.shape_cast %86 : vector<1x1x4x4xf32> to vector<4x4xf32>
    %88 = vector.shape_cast %85 : vector<4x4xf32> to vector<1x1x4x4xf32>
    tpu.vector_store %arg3[%c1_40, %c2_41, %c0_42, %c0_43], %88 {strides = array<i32>} : memref<2x4x4x4xf32, #tpu.memory_space<vmem>>, vector<1x1x4x4xf32>,
    %89 = vector.extract_strided_slice %54 {offsets = [0, 12], sizes = [4, 4], strides = [1, 1]} : vector<4x16xf32> to vector<4x4xf32>
    %90 = vector.extract_strided_slice %55 {offsets = [0, 12], sizes = [4, 4], strides = [1, 1]} : vector<4x16xf32> to vector<4x4xf32>
    %cst_44 = arith.constant dense<0.000000e+00> : vector<4x4xf32>
    %91 = tpu.matmul %89, %90, %cst_44 {dimension_numbers = #tpu.dot_dimension_numbers<[1], [1], [0], [0], [0, 0, 1, 0], [], []>} : vector<4x4xf32>, vector<4x4xf32>, vector<4x4xf32> -> vector<4x4xf32>
    %92 = arith.negf %91 : vector<4x4xf32>
    %93 = math.exp %92 : vector<4x4xf32>
    %cst_45 = arith.constant 1.000000e+00 : f32
    %94 = vector.broadcast %cst_45 : f32 to vector<4x4xf32>
    %95 = arith.addf %94, %93 : vector<4x4xf32>
    %96 = arith.divf %94, %95 : vector<4x4xf32>
    %c1_46 = arith.constant 1 : index
    %c3_47 = arith.constant 3 : index
    %c0_48 = arith.constant 0 : index
    %c0_49 = arith.constant 0 : index
    %97 = vector.load %arg3[%c1_46, %c3_47, %c0_48, %c0_49] : memref<2x4x4x4xf32, #tpu.memory_space<vmem>>, vector<1x1x4x4xf32>
    %98 = vector.shape_cast %97 : vector<1x1x4x4xf32> to vector<4x4xf32>
    %99 = vector.shape_cast %96 : vector<4x4xf32> to vector<1x1x4x4xf32>
    tpu.vector_store %arg3[%c1_46, %c3_47, %c0_48, %c0_49], %99 {strides = array<i32>} : memref<2x4x4x4xf32, #tpu.memory_space<vmem>>, vector<1x1x4x4xf32>,
    return
  }
}

</mosaic_0001>

<bundles_post_ra>
// kernel: tpu_custom_call.1
= control target key start
LH: loop header
LB: loop body
LE: loop exit
PB: predicated region body
PF: predicated region fallthrough
CT: control target
= control target key end

     0   :  { %8 = vsyncpa [#allocation3], 0  ;;  %s1146_s0 = inlined_call_operand.hbm [shape: f32[8,32], index: 0, kind: input, shape index: {}]   ;;  %s1147_s1 = inlined_call_operand.hbm [shape: f32[32,32], index: 1, kind: input, shape index: {}]   ;;  %s1148_s2 = inlined_call_operand.vmem [shape: f32[1,32], index: 2, kind: input, shape index: {}]   ;;  %s1149_s3 = inlined_call_operand.hbm [shape: f32[2,4,4,4], index: 3, kind: output, shape index: {}]  }
   0x1   :  { %9 = vsyncpa [#allocation6], 0 }
   0x2   :  { %10 = vsyncpa [#allocation4], 0  ;;  %s1044_s12 = smov [#allocation2]   ;;  %s1045_s14 = smov [#allocation5]  }
   0x3   :  { %s17_s13 = sshll.u32 %s1044_s12, 4  ;;  %s26_s15 = sshll.u32 %s1045_s14, 4  ;;  %s18_s13 = int_to_ptr.vmem [resolvable:$true] %s17_s13  ;;  %s27_s15 = int_to_ptr.vmem [resolvable:$true] %s26_s15 }
   0x4   :  { %s986_s16 = scalar_lea.vmem %s18_s13, 128  ;;  %p991_p1 = scmp.lt.s32.totalorder %s18_s13, %s18_s13 }
   0x5   :  { %p987_p0 = scmp.ne.s32.totalorder %s18_s13, %s986_s16  ;;  %p992_p2 = scmp.lt.s32.totalorder %s986_s16, %s986_s16 }
   0x7   :  { %p993_p3 = por %p992_p2, %p991_p1 }
   0x9   :  { %p994_p4 = pnand %p993_p3, %p987_p0 }
   0xb   :  { %997 = shalt.err (!%p994_p4)
}
   0xc   :  { %20 = dma.hbm_to_vmem [thread:$0]  %s1146_s0, 128, %s18_s13, [#allocation3]  }
   0xd   :  { %s1006_s19 = scalar_lea.vmem %s27_s15, 512  ;;  %p1011_p6 = scmp.lt.s32.totalorder %s27_s15, %s27_s15 }
   0xe   :  { %p1007_p5 = scmp.ne.s32.totalorder %s27_s15, %s1006_s19  ;;  %p1012_p7 = scmp.lt.s32.totalorder %s1006_s19, %s1006_s19 }
  0x10   :  { %p1013_p8 = por %p1012_p7, %p1011_p6 }
  0x12   :  { %p1014_p9 = pnand %p1013_p8, %p1007_p5 }
  0x14   :  { %1017 = shalt.err (!%p1014_p9)
}
  0x15   :  { %s1046_s20 = smov 128   ;;  %s1047_s21 = smov 8  }
  0x16   :  { %32 = dma.hbm_to_vmem [thread:$0]  %s1147_s1, 512, %s27_s15, [#allocation6], %s1046_s20, %s1046_s20, %s1047_s21  }
  0x17   :  { %1038 = dma.done.wait [#allocation3], 128  }
  0x18   :  { %1039 = vsyncadd [#allocation3], 4294967168 }
  0x19   :  { %1040 = dma.done.wait [#allocation6], 512  }
  0x1a   :  { %1041 = vsyncadd [#allocation6], 4294966784  ;;  %v1048_v0 = vmov 0.0   ;;  %vm1049_vm0 = vmmov 0   ;;  %v45_v1 = vld [vmem:[#allocation5 + $0x18] sm:$0xff]  ;;  %v44_v2 = vld [vmem:[#allocation5 + $0x10] sm:$0xff] }
  0x1b   :  { %879 = vmatprep.subr.mxu0 %v1048_v0  ;;  %887 = vmatprep.mubr.msk.f32.mxu0 %vm1049_vm0, %v1048_v0  ;;  %v43_v3 = vld [vmem:[#allocation5 + $0x8] sm:$0xff]  ;;  %v42_v4 = vld [vmem:[#allocation5] sm:$0xff]  ;;  %v41_v5 = vld [vmem:[#allocation2] sm:$0xff]  ;;  %vm53_vm1 = vcmask 261120   ;;  %s1050_s24 = smov 124   ;;  %s1051_s25 = smov 112  }
  0x1c   :  { %890 = vmatprep.subr.mxu1 %v1048_v0  ;;  %892 = vmatprep.mubr.msk.f32.mxu1 %vm1049_vm0, %v1048_v0  ;;  %v832_v6 = vld [vmem:[%s1148_s2] ss:$0 sm:$0xff]  ;;  %s1052_s26 = smov 104   ;;  %s1053_s27 = smov 108   ;;  %vm130_vm2 = vcmask 31744   ;;  %vm211_vm3 = vcmask 27648  }
  0x1d   :  { %880 = vmatpush3.msra.mxu0 %v45_v1  ;;  %s1054_s28 = smov 120   ;;  %s1055_s29 = smov 100  }
  0x1e   :  { %881 = vmatprep.subr.mxu0 %v1048_v0  ;;  %s1056_s30 = smov 116   ;;  %s1057_s2 = smov [#allocation7]  }
  0x1f   :  { %882 = vmatpush3.msra.mxu0 %v44_v2  ;;  %s819_s4 = sshll.u32 %s1057_s2, 4  ;;  %s820_s4 = int_to_ptr.vmem [resolvable:$true] %s819_s4 }
  0x20   :  { %883 = vmatprep.subr.mxu0 %v1048_v0  ;;  %s1018_s5 = scalar_lea.vmem %s820_s4, 512  ;;  %p1023_p11 = scmp.lt.s32.totalorder %s820_s4, %s820_s4 }
  0x21   :  { %884 = vmatpush3.msra.mxu0 %v43_v3  ;;  %p1019_p10 = scmp.ne.s32.totalorder %s820_s4, %s1018_s5  ;;  %p1024_p12 = scmp.lt.s32.totalorder %s1018_s5, %s1018_s5 }
  0x22   :  { %885 = vmatprep.subr.mxu0 %v1048_v0 }
  0x23   :  { %886 = vmatpush3.msra.mxu0 %v42_v4  ;;  %p1025_p13 = por %p1024_p12, %p1023_p11 }
  0x24   :  { %888 = vmatmul.mubr.msk.f32.vlgmr.msra.gmra.mxu0 %vm53_vm1, %v41_v5  ;;  %900 = vmatprep.subr.mxu0 %v1048_v0 }
  0x25   :  { %902 = vmatprep.mubr.msk.f32.mxu0 %vm1049_vm0, %v1048_v0  ;;  %p1026_p0 = pnand %p1025_p13, %p1019_p10 }
  0xe4   :  { %v123_v7 = vpop.f32.mrf.mxu0 }
  0xe5   :  { %v124_v8 = vadd.f32 %v832_v6, %v123_v7 }
  0xe6   :  { %v889_v9 = vpop.f32.mrf.mxu0 }
  0xe7   :  { %213 = vrot.lane.b32.xlu1 %v124_v8, %s1050_s24  ;;  %128 = vrot.lane.b32.xlu0 %v124_v8, %s1051_s25  ;;  %v471_v10 = vrot.slane %v124_v8, 4 }
  0xeb   :  { %301 = vrot.lane.b32.xlu1 %v124_v8, %s1052_s26  ;;  %215 = vrot.lane.b32.xlu0 %v124_v8, %s1053_s27 }
  0xef   :  { %299 = vrot.lane.b32.xlu1 %v124_v8, %s1054_s28  ;;  %387 = vrot.lane.b32.xlu0 %v124_v8, %s1055_s29 }
  0xf3   :  { %385 = vrot.lane.b32.xlu0 %v124_v8, %s1056_s30  ;;  %472 = vrot.lane.b32.xlu1 %v471_v10, %s1051_s25 }
  0xf7   :  { %558 = vrot.lane.b32.xlu0 %v471_v10, %s1053_s27  ;;  %556 = vrot.lane.b32.xlu1 %v471_v10, %s1050_s24 }
  0xfb   :  { %644 = vrot.lane.b32.xlu0 %v471_v10, %s1052_s26  ;;  %730 = vrot.lane.b32.xlu1 %v471_v10, %s1055_s29 }
  0xff   :  { %642 = vrot.lane.b32.xlu0 %v471_v10, %s1054_s28  ;;  %728 = vrot.lane.b32.xlu1 %v471_v10, %s1056_s30 }
 0x159   :  { %v214_v11 = vpop.permute.xlu1 %213  ;;  %v129_v12 = vpop.permute.xlu0 %128 }
 0x15a   :  { %891 = vmatpush3.xpose.msk.msra.mxu1 %vm130_vm2, %v129_v12 }
 0x15b   :  { %895 = vmatprep.subr.mxu1 %v1048_v0 }
 0x15d   :  { %v302_v13 = vpop.permute.xlu1 %301  ;;  %893 = vmatmul.mubr.msk.f32.vlgmr.msra.gmra.mxu1 %vm130_vm2, %v124_v8  ;;  %v216_v14 = vpop.permute.xlu0 %215 }
 0x15e   :  { %896 = vmatpush3.xpose.msk.msra.mxu1 %vm130_vm2, %v216_v14  ;;  %901 = vmatpush3.xpose.msk.msra.mxu0 %vm130_vm2, %v302_v13 }
 0x15f   :  { %897 = vmatprep.mubr.msk.f32.mxu1 %vm1049_vm0, %v1048_v0  ;;  %905 = vmatprep.subr.mxu1 %v1048_v0 }
 0x160   :  { %910 = vmatprep.subr.mxu0 %v1048_v0 }
 0x161   :  { %v300_v15 = vpop.permute.xlu1 %299  ;;  %898 = vmatmul.mubr.msk.f32.vlgmr.msra.gmra.mxu1 %vm130_vm2, %v214_v11  ;;  %v388_v16 = vpop.permute.xlu0 %387 }
 0x162   :  { %903 = vmatmul.mubr.msk.f32.vlgmr.msra.gmra.mxu0 %vm130_vm2, %v300_v15  ;;  %906 = vmatpush3.xpose.msk.msra.mxu1 %vm130_vm2, %v388_v16 }
 0x163   :  { %907 = vmatprep.mubr.msk.f32.mxu1 %vm1049_vm0, %v1048_v0  ;;  %912 = vmatprep.mubr.msk.f32.mxu0 %vm1049_vm0, %v1048_v0 }
 0x164   :  { %915 = vmatprep.subr.mxu1 %v1048_v0 }
 0x165   :  { %v386_v17 = vpop.permute.xlu0 %385  ;;  %v473_v18 = vpop.permute.xlu1 %472 }
 0x166   :  { %908 = vmatmul.mubr.msk.f32.vlgmr.msra.gmra.mxu1 %vm130_vm2, %v386_v17  ;;  %911 = vmatpush3.xpose.msk.msra.mxu0 %vm130_vm2, %v473_v18 }
 0x167   :  { %917 = vmatprep.mubr.msk.f32.mxu1 %vm1049_vm0, %v1048_v0  ;;  %920 = vmatprep.subr.mxu0 %v1048_v0 }
 0x169   :  { %v559_v19 = vpop.permute.xlu0 %558  ;;  %913 = vmatmul.mubr.msk.f32.vlgmr.msra.gmra.mxu0 %vm130_vm2, %v471_v10  ;;  %v557_v20 = vpop.permute.xlu1 %556 }
 0x16a   :  { %916 = vmatpush3.xpose.msk.msra.mxu1 %vm130_vm2, %v559_v19  ;;  %922 = vmatprep.mubr.msk.f32.mxu0 %vm1049_vm0, %v1048_v0 }
 0x16b   :  { %925 = vmatprep.subr.mxu1 %v1048_v0 }
 0x16d   :  { %v645_v21 = vpop.permute.xlu0 %644  ;;  %918 = vmatmul.mubr.msk.f32.vlgmr.msra.gmra.mxu1 %vm130_vm2, %v557_v20  ;;  %v731_v22 = vpop.permute.xlu1 %730 }
 0x16e   :  { %921 = vmatpush3.xpose.msk.msra.mxu0 %vm130_vm2, %v645_v21  ;;  %926 = vmatpush3.xpose.msk.msra.mxu1 %vm130_vm2, %v731_v22 }
 0x16f   :  { %927 = vmatprep.mubr.msk.f32.mxu1 %vm1049_vm0, %v1048_v0 }
 0x171   :  { %v643_v23 = vpop.permute.xlu0 %642  ;;  %v729_v24 = vpop.permute.xlu1 %728 }
 0x172   :  { %923 = vmatmul.mubr.msk.f32.vlgmr.msra.gmra.mxu0 %vm130_vm2, %v643_v23  ;;  %928 = vmatmul.mubr.msk.f32.vlgmr.msra.gmra.mxu1 %vm130_vm2, %v729_v24 }
 0x21d   :  { %v201_v25 = vpop.f32.mrf.mxu1 }
 0x21e   :  { %v836_v26 = vmul.f32 -1.442695, %v201_v25 }
 0x21f   :  { %v894_v27 = vpop.f32.mrf.mxu1 }
 0x220   :  { %946 = vpow2.f32 %v836_v26 }
 0x221   :  { %v287_v28 = vpop.f32.mrf.mxu1 }
 0x222   :  { %v839_v29 = vmul.f32 -1.442695, %v287_v28  ;;  %v373_v30 = vpop.f32.mrf.mxu0 }
 0x223   :  { %v842_v31 = vmul.f32 -1.442695, %v373_v30  ;;  %v899_v32 = vpop.f32.mrf.mxu1 }
 0x224   :  { %948 = vpow2.f32 %v839_v29  ;;  %v904_v33 = vpop.f32.mrf.mxu0 }
 0x225   :  { %950 = vpow2.f32 %v842_v31 }
 0x226   :  { %v459_v34 = vpop.f32.mrf.mxu1 }
 0x227   :  { %v845_v35 = vmul.f32 -1.442695, %v459_v34 }
 0x228   :  { %v909_v36 = vpop.f32.mrf.mxu1 }
 0x229   :  { %952 = vpow2.f32 %v845_v35  ;;  %v544_v37 = vpop.f32.mrf.mxu0 }
 0x22a   :  { %v848_v38 = vmul.f32 -1.442695, %v544_v37 }
 0x22b   :  { %v914_v39 = vpop.f32.mrf.mxu0 }
 0x22c   :  { %954 = vpow2.f32 %v848_v38 }
 0x22d   :  { %v947_v40 = vpop.eup %946  ;;  %v630_v41 = vpop.f32.mrf.mxu1 }
 0x22e   :  { %v208_v42 = vadd.f32 1.0, %v947_v40  ;;  %v851_v43 = vmul.f32 -1.442695, %v630_v41 }
 0x22f   :  { %v919_v44 = vpop.f32.mrf.mxu1 }
 0x230   :  { %956 = vrcp.f32 %v208_v42 }
 0x231   :  { %v949_v45 = vpop.eup %948  ;;  %958 = vpow2.f32 %v851_v43 }
 0x232   :  { %v951_v46 = vpop.eup %950  ;;  %v294_v47 = vadd.f32 1.0, %v949_v45  ;;  %v716_v48 = vpop.f32.mrf.mxu0 }
 0x233   :  { %v802_v49 = vpop.f32.mrf.mxu1  ;;  %v380_v50 = vadd.f32 1.0, %v951_v46  ;;  %v854_v51 = vmul.f32 -1.442695, %v716_v48 }
 0x234   :  { %v857_v52 = vmul.f32 -1.442695, %v802_v49  ;;  %960 = vrcp.f32 %v294_v47  ;;  %v924_v53 = vpop.f32.mrf.mxu0 }
 0x235   :  { %v929_v54 = vpop.f32.mrf.mxu1  ;;  %962 = vrcp.f32 %v380_v50 }
 0x236   :  { %v953_v55 = vpop.eup %952  ;;  %964 = vpow2.f32 %v854_v51 }
 0x237   :  { %v466_v56 = vadd.f32 1.0, %v953_v55  ;;  %966 = vpow2.f32 %v857_v52 }
 0x239   :  { %v955_v57 = vpop.eup %954  ;;  %968 = vrcp.f32 %v466_v56 }
 0x23a   :  { %v551_v58 = vadd.f32 1.0, %v955_v57 }
 0x23c   :  { %970 = vrcp.f32 %v551_v58 }
 0x23d   :  { %v957_v59 = vpop.eup %956 }
 0x23e   :  { %v959_v60 = vpop.eup %958  ;;  %212 = vst.msk [vmem:[#allocation7] sm:$0xf] %vm211_vm3, %v957_v59 }
 0x23f   :  { %v637_v61 = vadd.f32 1.0, %v959_v60 }
 0x241   :  { %v961_v62 = vpop.eup %960  ;;  %972 = vrcp.f32 %v637_v61 }
 0x242   :  { %v963_v63 = vpop.eup %962  ;;  %298 = vst.msk [vmem:[#allocation7 + $0x4] sm:$0xf] %vm211_vm3, %v961_v62 }
 0x243   :  { %v965_v0 = vpop.eup %964  ;;  %384 = vst.msk [vmem:[#allocation7 + $0x8] sm:$0xf] %vm211_vm3, %v963_v63 }
 0x244   :  { %v967_v1 = vpop.eup %966  ;;  %v723_v2 = vadd.f32 1.0, %v965_v0 }
 0x245   :  { %v809_v3 = vadd.f32 1.0, %v967_v1 }
 0x246   :  { %v969_v4 = vpop.eup %968  ;;  %974 = vrcp.f32 %v723_v2 }
 0x247   :  { %976 = vrcp.f32 %v809_v3  ;;  %470 = vst.msk [vmem:[#allocation7 + $0xc] sm:$0xf] %vm211_vm3, %v969_v4 }
 0x249   :  { %v971_v5 = vpop.eup %970 }
 0x24a   :  { %555 = vst.msk [vmem:[#allocation7 + $0x10] sm:$0xf] %vm211_vm3, %v971_v5 }
 0x24e   :  { %v973_v6 = vpop.eup %972 }
 0x24f   :  { %641 = vst.msk [vmem:[#allocation7 + $0x14] sm:$0xf] %vm211_vm3, %v973_v6 }
 0x253   :  { %v975_v7 = vpop.eup %974 }
 0x254   :  { %v977_v8 = vpop.eup %976  ;;  %727 = vst.msk [vmem:[#allocation7 + $0x18] sm:$0xf] %vm211_vm3, %v975_v7 }
 0x255   :  { %813 = vst.msk [vmem:[#allocation7 + $0x1c] sm:$0xf] %vm211_vm3, %v977_v8 }
 0x256   :  { %1029 = shalt.err (!%p1026_p0)
}
 0x257   :  { %s1058_s6 = smov 64   ;;  %s1059_s7 = smov 4  }
 0x258   :  { %825 = dma.vmem_to_hbm [thread:$0]  %s820_s4, 512, %s1149_s3, [#allocation4], %s1058_s6, %s1058_s6, %s1059_s7  }
 0x259   :  { %1042 = dma.done.wait [#allocation4], 512  }
 0x25a   :  { %1043 = vsyncadd [#allocation4], 4294966784 }
 0x25b   :  { %829 = vsyncpa [#allocation3], 1 }
 0x25c   :  { %830 = vsyncpa [#allocation6], 1 }
 0x25d   :  { %831 = vsyncpa [#allocation4], 1 }

</bundles_post_ra>
